<compile_context>
chip_gen: v7x
topology: tpu7x:2x2x1
jax: 0.10.0
libtpu: 0.0.40
codegen_flags: <defaults>
</compile_context>

<pallas_src>
import jax
import jax.numpy as jnp
from jax import lax
from jax.experimental import pallas as pl
from jax.experimental.pallas import tpu as pltpu


def _read_kernel(mem_ref, memt_ref, q_ref, o_ref):
    # mem_ref : (M, D)   memory bank (grid-invariant, resident)
    # memt_ref: (D, M)   pre-transposed memory bank (grid-invariant, resident)
    # q_ref   : (D, THW) channel-major query tile of one batch element
    # o_ref   : (D, THW) channel-major output tile (natively NCHW-ordered)
    mem = mem_ref[...]          # native dtype; no per-step cast / transpose
    mem_t = memt_ref[...]
    q = q_ref[...]

    # score[m, p] = sum_d mem[m, d] * q[d, p]   -> (M, THW), f32 acc on the MXU
    score = jnp.dot(mem, q, preferred_element_type=jnp.float32)

    # softmax over the memory-slot axis (dim=1 of the (N, M) score in torch,
    # which is axis 0 here). Exact per column; no cross-tile reduction needed.
    score_max = jnp.max(score, axis=0, keepdims=True)
    p = jnp.exp(score - score_max)
    denom = jnp.sum(p, axis=0, keepdims=True)
    p = p * pl.reciprocal(denom, approx=True)   # divide goes to the EUP slot

    # out[d, p] = sum_m mem[m, d] * p[m, p]     -> (D, THW)
    out = jnp.dot(mem_t, p.astype(mem_t.dtype),
                  preferred_element_type=jnp.float32)
    o_ref[...] = out.astype(o_ref.dtype)


def memory_trans_read(keys, query, value=None, *, tile_hw=1024,
                      out_dtype=jnp.float32):
    """Pallas TPU implementation of Memory_trans_read.forward.

    keys : (M, D)        memory bank
    query: (B, D, H, W)  NCHW feature map
    value: unused by the module's output (kept only for API parity)

    tile_hw: spatial tile width (rounded down to a multiple of 128 when H*W is
             tiled). On v7x (64 MiB VMEM/TC) keep M * tile_hw * 4 (f32 score
             tile) + tiles comfortably under the scoped VMEM limit.
    """
    del value  # the torch module only reshapes `value`; it never reaches the output
    B, D, H, W = query.shape
    M, Dm = keys.shape
    assert D == Dm, "memory dim must match query channel dim"
    HW = H * W

    # Channel-major flatten: (B, D, H*W). No transpose -> no extra HBM pass.
    q_flat = query.reshape(B, D, HW)

    if HW <= tile_hw:
        t = HW                                   # full spatial extent per block
        hw_pad = HW
    else:
        t = max(128, (tile_hw // 128) * 128)     # lane-aligned tile width
        hw_pad = pl.cdiv(HW, t) * t
        if hw_pad != HW:
            # Zero-pad the ragged tail; padded columns produce a uniform softmax
            # (harmless) and are sliced off below.
            q_flat = jnp.pad(q_flat, ((0, 0), (0, 0), (0, hw_pad - HW)))

    # One-time tiny transpose of the memory bank (M*D elements) so both in-kernel
    # matmuls are canonical, non-transposed MXU matmuls.
    keys_t = jnp.transpose(keys, (1, 0))

    out_flat = pl.pallas_call(
        _read_kernel,
        out_shape=jax.ShapeDtypeStruct((B, D, hw_pad), out_dtype),
        grid_spec=pltpu.PrefetchScalarGridSpec(
            num_scalar_prefetch=0,
            grid=(B, hw_pad // t),
            in_specs=[
                pl.BlockSpec((M, D), lambda b, j: (0, 0)),           # memory bank
                pl.BlockSpec((D, M), lambda b, j: (0, 0)),           # memory bank^T
                pl.BlockSpec((None, D, t), lambda b, j: (b, 0, j)),  # (D, THW) tile
            ],
            out_specs=pl.BlockSpec((None, D, t), lambda b, j: (b, 0, j)),
        ),
        compiler_params=pltpu.CompilerParams(
            # Both grid axes are independent -> shard across TensorCores
            # (v7x has 2 TCs/chip).
            dimension_semantics=("parallel", "parallel"),
        ),
    )(keys, keys_t, q_flat)

    if hw_pad != HW:
        out_flat = out_flat[..., :HW]
    return out_flat.reshape(B, D, H, W)


def _reference(keys, query):
    # Pure-JAX reference of the torch forward.
    B, D, H, W = query.shape
    q = jnp.transpose(query, (0, 2, 3, 1)).reshape(B * H * W, D).astype(jnp.float32)
    score = q @ keys.astype(jnp.float32).T
    p = jax.nn.softmax(score, axis=1)
    out = p @ keys.astype(jnp.float32)
    return jnp.transpose(out.reshape(B, H, W, D), (0, 3, 1, 2))


if __name__ == "__main__":
    # Small shapes consistent with the module: query (B, D, H, W), memory (M, D).
    B, D, H, W = 2, 32, 8, 8
    M = 64

    key = jax.random.PRNGKey(0)
    k_mem, k_q, k_v = jax.random.split(key, 3)
    keys_mem = jax.random.normal(k_mem, (M, D), dtype=jnp.float32)
    query = jax.random.normal(k_q, (B, D, H, W), dtype=jnp.float32)
    value = jax.random.normal(k_v, (B, D, H, W), dtype=jnp.float32)  # unused, matches torch API

    out = memory_trans_read(keys_mem, query, value)
    out = jax.block_until_ready(out)

    ref = _reference(keys_mem, query)
    assert out.shape == (B, D, H, W)
    # approx reciprocal (EUP vrcp) introduces ~1e-4-level drift vs exact softmax
    assert jnp.allclose(out, ref, atol=5e-3, rtol=5e-3), "mismatch vs reference"

    # Second shape: exercises the multi-tile + ragged-tail (pad & slice) path.
    H2, W2 = 20, 20  # H*W = 400, not a multiple of the 128-aligned tile
    query2 = jax.random.normal(jax.random.PRNGKey(1), (B, D, H2, W2), dtype=jnp.float32)
    out2 = jax.block_until_ready(memory_trans_read(keys_mem, query2, None, tile_hw=128))
    ref2 = _reference(keys_mem, query2)
    assert out2.shape == (B, D, H2, W2)
    assert jnp.allclose(out2, ref2, atol=5e-3, rtol=5e-3), "mismatch vs reference (tiled/padded)"

    print("KERNEL_OK")
</pallas_src>

<mosaic_0001>
module attributes {stable_mosaic.version = 11 : i64} {
  func.func @_read_kernel(%arg0: i32, %arg1: i32, %arg2: memref<64x32xf32, #tpu.memory_space<vmem>>, %arg3: memref<32x64xf32, #tpu.memory_space<vmem>>, %arg4: memref<1x32x64xf32, #tpu.memory_space<vmem>>, %arg5: memref<1x32x64xf32, #tpu.memory_space<vmem>>) attributes {dimension_semantics = [#tpu.dimension_semantics<parallel>, #tpu.dimension_semantics<parallel>], iteration_bounds = array<i64: 2, 1>, scalar_prefetch = 0 : i64, scratch_operands = 0 : i64, tpu.core_type = #tpu.core_type<tc>, window_params = [{pipeline_mode = #tpu.pipeline_mode<synchronous>, transform_indices = @transform_0, window_bounds = array<i64: 64, 32>}, {pipeline_mode = #tpu.pipeline_mode<synchronous>, transform_indices = @transform_1, window_bounds = array<i64: 32, 64>}, {transform_indices = @transform_2, window_bounds = array<i64: 1, 32, 64>}, {transform_indices = @transform_3, window_bounds = array<i64: 1, 32, 64>}]} {
    %c0 = arith.constant 0 : index
    %c0_0 = arith.constant 0 : index
    %0 = vector.load %arg2[%c0, %c0_0] : memref<64x32xf32, #tpu.memory_space<vmem>>, vector<64x32xf32>
    %c0_1 = arith.constant 0 : index
    %c0_2 = arith.constant 0 : index
    %1 = vector.load %arg3[%c0_1, %c0_2] : memref<32x64xf32, #tpu.memory_space<vmem>>, vector<32x64xf32>
    %c0_3 = arith.constant 0 : index
    %c0_4 = arith.constant 0 : index
    %c0_5 = arith.constant 0 : index
    %2 = vector.load %arg4[%c0_3, %c0_4, %c0_5] : memref<1x32x64xf32, #tpu.memory_space<vmem>>, vector<1x32x64xf32>
    %3 = vector.shape_cast %2 : vector<1x32x64xf32> to vector<32x64xf32>
    %cst = arith.constant dense<0.000000e+00> : vector<64x64xf32>
    %4 = tpu.matmul %0, %3, %cst {dimension_numbers = #tpu.dot_dimension_numbers<[1], [0], [0], [1], [0, 0, 1, 1], [], []>} : vector<64x32xf32>, vector<32x64xf32>, vector<64x64xf32> -> vector<64x64xf32>
    %cst_6 = arith.constant dense<0xFF800000> : vector<64xf32>
    %5 = vector.multi_reduction <maximumf>, %4, %cst_6 [0] : vector<64x64xf32> to vector<64xf32>
    %6 = vector.shape_cast %5 : vector<64xf32> to vector<1x64xf32>
    %7 = vector.broadcast %6 : vector<1x64xf32> to vector<64x64xf32>
    %8 = arith.subf %4, %7 : vector<64x64xf32>
    %9 = math.exp %8 : vector<64x64xf32>
    %cst_7 = arith.constant dense<0.000000e+00> : vector<64xf32>
    %10 = vector.multi_reduction <add>, %9, %cst_7 [0] : vector<64x64xf32> to vector<64xf32>
    %11 = vector.shape_cast %10 : vector<64xf32> to vector<1x64xf32>
    %12 = tpu.reciprocal %11 {approx = true} : vector<1x64xf32> -> vector<1x64xf32>
    %13 = vector.broadcast %12 : vector<1x64xf32> to vector<64x64xf32>
    %14 = arith.mulf %9, %13 : vector<64x64xf32>
    %cst_8 = arith.constant dense<0.000000e+00> : vector<32x64xf32>
    %15 = tpu.matmul %1, %14, %cst_8 {dimension_numbers = #tpu.dot_dimension_numbers<[1], [0], [0], [1], [0, 0, 1, 1], [], []>} : vector<32x64xf32>, vector<64x64xf32>, vector<32x64xf32> -> vector<32x64xf32>
    %c0_9 = arith.constant 0 : index
    %c0_10 = arith.constant 0 : index
    %c0_11 = arith.constant 0 : index
    %16 = vector.load %arg5[%c0_9, %c0_10, %c0_11] : memref<1x32x64xf32, #tpu.memory_space<vmem>>, vector<1x32x64xf32>
    %17 = vector.shape_cast %16 : vector<1x32x64xf32> to vector<32x64xf32>
    %18 = vector.shape_cast %15 : vector<32x64xf32> to vector<1x32x64xf32>
    tpu.vector_store %arg5[%c0_9, %c0_10, %c0_11], %18 {strides = array<i32>} : memref<1x32x64xf32, #tpu.memory_space<vmem>>, vector<1x32x64xf32>,
    return
  }
  func.func @transform_0(%arg0: i32, %arg1: i32) -> (i32, i32) {
    %c0_i32 = arith.constant 0 : i32
    %c0_i32_0 = arith.constant 0 : i32
    %c0_i32_1 = arith.constant 0 : i32
    return %c0_i32, %c0_i32_0 : i32, i32
  }
  func.func @transform_1(%arg0: i32, %arg1: i32) -> (i32, i32) {
    %c0_i32 = arith.constant 0 : i32
    %c0_i32_0 = arith.constant 0 : i32
    %c0_i32_1 = arith.constant 0 : i32
    return %c0_i32, %c0_i32_0 : i32, i32
  }
  func.func @transform_2(%arg0: i32, %arg1: i32) -> (i32, i32, i32) {
    %c0_i32 = arith.constant 0 : i32
    %c0_i32_0 = arith.constant 0 : i32
    return %arg0, %c0_i32, %arg1 : i32, i32, i32
  }
  func.func @transform_3(%arg0: i32, %arg1: i32) -> (i32, i32, i32) {
    %c0_i32 = arith.constant 0 : i32
    %c0_i32_0 = arith.constant 0 : i32
    return %arg0, %c0_i32, %arg1 : i32, i32, i32
  }
}

</mosaic_0001>

<bundles_post_ra>
// kernel: tpu_custom_call.1
= control target key start
LH: loop header
LB: loop body
LE: loop exit
PB: predicated region body
PF: predicated region fallthrough
CT: control target
= control target key end

     0   :  { %8 = vsyncpa [#allocation3], 0  ;;  %s1088_s0 = inlined_call_operand.vmem [shape: f32[64,32], index: 0, kind: input, shape index: {}]   ;;  %s1089_s1 = inlined_call_operand.vmem [shape: f32[32,64], index: 1, kind: input, shape index: {}]   ;;  %s1090_s2 = inlined_call_operand.vmem [shape: f32[2,32,64], index: 2, kind: input, shape index: {}]   ;;  %s1091_s3 = inlined_call_operand.hbm [shape: f32[2,32,64], index: 3, kind: output, shape index: {}]  }
   0x1   :  { %10 = vsyncpa [#allocation3 + $0x1], 0  ;;  %s905_s12 = smov 0   ;;  %s907_s13 = smov 0  }
   0x2   :  { %s909_s14 = smov 0   ;;  %s911_s15 = smov 0  }
   0x3   :  { %s913_s16 = smov 0   ;;  %s915_s17 = smov 0  }
   0x4 LB: > { %s610_s18 = sadd.s32 4294967295, %s880_s17   ;;  %s611_s19 = sadd.s32 4294967294, %s880_s17   ;;  %s880_s17 = sphi %s915_s17, %s16_s17   ;;  %s876_s16 = sphi %s913_s16, %s1098_s16   ;;  %s872_s15 = sphi %s911_s15, %s1097_s15   ;;  %s868_s14 = sphi %s909_s14, %s1096_s14   ;;  %s864_s13 = sphi %s907_s13, %s1095_s13   ;;  %s860_s12 = sphi %s905_s12, %s1094_s12  }
   0x5   : > { %s28_s20 = sadd.s32 1, %s876_s16  ;;  %s107_s21 = sadd.s32 1, %s868_s14 }
   0x6   : > { %p30_p0 = scmp.ge.s32.totalorder %s28_s20, 2  ;;  %p117_p1 = scmp.ne.s32.totalorder %s868_s14, %s864_s13 }
   0x7   : > { %p118_p2 = scmp.eq.s32.totalorder %s610_s18, 1  ;;  %p123_p3 = scmp.ne.s32.totalorder %s864_s13, %s860_s12 }
   0x8   : > { %s1100_s20 = smov (%p30_p0, %s28_s20), 0  ;;  %p124_p5 = scmp.eq.s32.totalorder %s611_s19, 1 }
   0x9   : > { %p945_p4 = por %p118_p2, %p117_p1  ;;  %s102_s23 = ssub.s32 %s876_s16, %s1100_s20 }
   0xa   : > { %p614_p6 = scmp.ge.s32.totalorder %s880_s17, 1  ;;  %p105_p7 = scmp.eq.s32.totalorder %s102_s23, 0 }
   0xb   : > { %p952_p8 = por %p124_p5, %p123_p3  ;;  %p159_p9 = scmp.lt.s32.totalorder %s880_s17, 3 }
   0xc   : > { %s958_s25 = scalar_select %p105_p7, %s868_s14, %s107_s21  }
   0xd   : > { %p160_p10 = pnand %p614_p6, %p159_p9 }
   0xe   : > { %p186_p11 = scmp.lt.s32.totalorder (!%p160_p10), %s872_s15, 1  ;;  %v194_v0 = vld [vmem:[%s1088_s0] sm:$0xff] (!%p160_p10)  ;;  %vm210_vm0 = vcmask (!%p160_p10), 261120   ;;  %v195_v7 = vld [vmem:[%s1088_s0 + $0x8] sm:$0xff] (!%p160_p10)  ;;  %v196_v8 = vld [vmem:[%s1088_s0 + $0x10] sm:$0xff] (!%p160_p10)  ;;  %vm340_vm1 = vcmask (!%p160_p10), 523264  }
   0xf   : > { %163 = sbr.rel (%p160_p10) target bundleno = 587 (0x24b), region = 32  ;;  %669 = vmatprep.mubr.msk.f32.mxu0 (!%p160_p10), %vm210_vm0, %v194_v0  ;;  %v197_v9 = vld [vmem:[%s1088_s0 + $0x18] sm:$0xff] (!%p160_p10)  ;;  %v198_v10 = vld [vmem:[%s1088_s0 + $0x20] sm:$0xff] (!%p160_p10)  ;;  %v199_v11 = vld [vmem:[%s1088_s0 + $0x28] sm:$0xff] (!%p160_p10)  ;;  %s183_s11 = sand.u32 (!%p160_p10), 1, %s864_s13  }
  0x10   : > { %v200_v12 = vld [vmem:[%s1088_s0 + $0x30] sm:$0xff] (!%p160_p10)  ;;  %v201_v13 = vld [vmem:[%s1088_s0 + $0x38] sm:$0xff] (!%p160_p10)  ;;  %v202_v14 = vld [vmem:[%s1089_s1] sm:$0xff] (!%p160_p10)  ;;  %s615_s18 = sshll.u32 (!%p160_p10), %s183_s11, 5  ;;  %s636_s23 = sshll.u32 (!%p160_p10), %s872_s15, 9 }
  0x11   : > { %697 = vmatprep.mubr.msk.f32.mxu1 (!%p160_p10), %vm340_vm1, %v202_v14  ;;  %s185_s19 = scalar_lea.vmem (!%p160_p10), [#allocation2], %s615_s18  ;;  %s882_s30 = smov (!%p160_p10), [#allocation2]  }
  0x12   : > { %s532_s21 = sshll.u32 (!%p160_p10), %s185_s19, 4  ;;  %s806_s4 = sshll.u32 (!%p160_p10), %s882_s30, 4  ;;  %s1033_s21 = int_to_ptr.vmem [resolvable:$true] %s532_s21  ;;  %s807_s4 = int_to_ptr.vmem [resolvable:$false] %s806_s4 }
  0x13   : > { %p809_p1 = scmp.lt.s32.totalorder (!%p160_p10), %s1033_s21, %s807_s4 }
  0x16   : > { %s187_s28 = scalar_select %p186_p11, %s872_s15, 1 }
  0x17   : > { %s802_s15 = scalar_lea.vmem %s1033_s21, 512 }
  0x18   : > { %s635_s29 = sshll.u32 %s187_s28, 5  ;;  %s1038_s28 = scalar_lea.hbm %s1091_s3, %s636_s23 }
  0x19   : > { %s193_s5 = scalar_lea.vmem %s1090_s2, %s635_s29  ;;  %s1042_s29 = scalar_lea.sflag [#allocation3], %s183_s11 }
  0x1a   : > { %v206_v1 = vld [vmem:[%s193_s5] sm:$0xff]  ;;  %v207_v2 = vld [vmem:[%s193_s5 + $0x8] sm:$0xff]  ;;  %v208_v3 = vld [vmem:[%s193_s5 + $0x10] sm:$0xff]  ;;  %p803_p12 = scmp.ne.s32.totalorder %s1033_s21, %s802_s15 }
  0x1b   : > { %v703_v4 = vpack.c.bf16 %v207_v2, %v206_v1  ;;  %v209_v5 = vld [vmem:[%s193_s5 + $0x18] sm:$0xff]  ;;  %s808_s5 = scalar_lea.vmem %s807_s4, 1024 }
  0x1c   : > { %v707_v6 = vpack.c.bf16 %v209_v5, %v208_v3  ;;  %p804_p13 = pnand %p803_p12, %p945_p4  ;;  %p810_p2 = scmp.lt.s32.totalorder %s808_s5, %s802_s15 }
  0x1d   : > { %704 = vmatprep.subr.bf16.mxu0 %v703_v4 }
  0x1e   : > { %706 = vmatpush3.bf16.msra.mxu0 %v703_v4  ;;  %p805_p0 = pneg %p804_p13  ;;  %p811_p3 = por %p810_p2, %p809_p1 }
  0x1f   : > { %708 = vmatprep.subr.bf16.mxu0 %v707_v6 }
  0x20   : > { %p812_p5 = pnand %p811_p3, %p805_p0 }
  0x22   : > { %710 = vmatpush3.bf16.msra.mxu0 %v707_v6 }
  0x25   : > { %670 = vmatmul.mubr.msk.f32.vlgmr.msra.gmra.mrb[0].mxu0 %vm210_vm0, %v195_v7 }
  0x26   : > { %672 = vmatprep.mubr.msk.f32.mxu0 %vm210_vm0, %v196_v8 }
  0x29   : > { %673 = vmatmul.mubr.msk.f32.gmra.mrb[2].mxu0 %vm210_vm0, %v197_v9 }
  0x2a   : > { %675 = vmatprep.mubr.msk.f32.mxu0 %vm210_vm0, %v198_v10 }
  0x2d   : > { %676 = vmatmul.mubr.msk.f32.gmra.mrb[4].mxu0 %vm210_vm0, %v199_v11 }
  0x2e   : > { %678 = vmatprep.mubr.msk.f32.mxu0 %vm210_vm0, %v200_v12 }
  0x31   : > { %679 = vmatmul.mubr.msk.f32.gmra.mrb[6].mxu0 %vm210_vm0, %v201_v13 }
  0xf8   : > { %v671_v15 = vpop.f32.mrb[0].mxu0 }
  0xf9   : > { %v301_v16 = vpop.f32.mrb[1].mxu0  ;;  %v342_v20 = vsel %vm340_vm1, %v671_v15, -inf }
  0xfa   : > { %v341_v23 = vsel %vm340_vm1, %v301_v16, -inf }
  0xfc   : > { %v674_v17 = vpop.f32.mrb[2].mxu0 }
  0xfd   : > { %v311_v18 = vpop.f32.mrb[3].mxu0  ;;  %v344_v28 = vsel %vm340_vm1, %v674_v17, -inf }
  0xfe   : > { %v343_v32 = vsel %vm340_vm1, %v311_v18, -inf }
 0x100   : > { %v677_v19 = vpop.f32.mrb[4].mxu0 }
 0x101   : > { %v347_v21 = vsel %vm340_vm1, %v677_v19, -inf  ;;  %v321_v22 = vpop.f32.mrb[5].mxu0 }
 0x102   : > { %v348_v24 = vmax.f32 %v342_v20, %v347_v21  ;;  %v345_v25 = vsel %vm340_vm1, %v321_v22, -inf }
 0x103   : > { %v346_v26 = vmax.f32 %v341_v23, %v345_v25 }
 0x104   : > { %v680_v27 = vpop.f32.mrb[6].mxu0 }
 0x105   : > { %v353_v29 = vmax.f32 %v346_v26, %v348_v24  ;;  %v351_v30 = vsel %vm340_vm1, %v680_v27, -inf  ;;  %v331_v31 = vpop.f32.mrb[7].mxu0 }
 0x106   : > { %v352_v33 = vmax.f32 %v344_v28, %v351_v30  ;;  %v349_v34 = vsel %vm340_vm1, %v331_v31, -inf }
 0x107   : > { %v350_v35 = vmax.f32 %v343_v32, %v349_v34 }
 0x109   : > { %v354_v36 = vmax.f32 %v350_v35, %v352_v33 }
 0x10b   : > { %v355_v37 = vmax.f32 %v353_v29, %v354_v36 }
 0x10d   : > { %v356_v38 = vrot.slane %v355_v37, 4 }
 0x10f   : > { %v357_v39 = vmax.f32 %v355_v37, %v356_v38  ;;  %v203_v38 = vld [vmem:[%s1089_s1 + $0x8] sm:$0xff] }
 0x111   : > { %v358_v40 = vrot.slane %v357_v39, 2 }
 0x113   : > { %v359_v41 = vmax.f32 %v357_v39, %v358_v40  ;;  %v204_v39 = vld [vmem:[%s1089_s1 + $0x10] sm:$0xff]  ;;  %v205_v40 = vld [vmem:[%s1089_s1 + $0x18] sm:$0xff] }
 0x115   : > { %v360_v42 = vrot.slane %v359_v41, 1 }
 0x117   : > { %v361_v43 = vmax.f32 %v359_v41, %v360_v42 }
 0x119   : > { %v362_v44 = vsub.f32 %v301_v16, %v361_v43  ;;  %v363_v45 = vsub.f32 %v671_v15, %v361_v43  ;;  %v364_v46 = vsub.f32 %v311_v18, %v361_v43  ;;  %v365_v47 = vsub.f32 %v674_v17, %v361_v43 }
 0x11a   : > { %v366_v48 = vsub.f32 %v321_v22, %v361_v43  ;;  %v367_v49 = vsub.f32 %v677_v19, %v361_v43  ;;  %v368_v50 = vsub.f32 %v331_v31, %v361_v43  ;;  %v369_v51 = vsub.f32 %v680_v27, %v361_v43 }
 0x11b   : > { %v370_v52 = vmul.f32 1.442695, %v362_v44  ;;  %v372_v53 = vmul.f32 1.442695, %v363_v45  ;;  %v374_v54 = vmul.f32 1.442695, %v364_v46 }
 0x11c   : > { %v376_v55 = vmul.f32 1.442695, %v365_v47  ;;  %v378_v56 = vmul.f32 1.442695, %v366_v48  ;;  %v380_v57 = vmul.f32 1.442695, %v367_v49 }
 0x11d   : > { %784 = vpow2.f32 %v370_v52  ;;  %v382_v58 = vmul.f32 1.442695, %v368_v50  ;;  %v384_v59 = vmul.f32 1.442695, %v369_v51 }
 0x11e   : > { %786 = vpow2.f32 %v372_v53 }
 0x11f   : > { %788 = vpow2.f32 %v374_v54 }
 0x120   : > { %790 = vpow2.f32 %v376_v55 }
 0x121   : > { %792 = vpow2.f32 %v378_v56 }
 0x122   : > { %794 = vpow2.f32 %v380_v57 }
 0x123   : > { %796 = vpow2.f32 %v382_v58 }
 0x124   : > { %798 = vpow2.f32 %v384_v59 }
 0x127   : > { %v785_v60 = vpop.eup %784 }
 0x128   : > { %v787_v61 = vpop.eup %786  ;;  %v386_v62 = vsel %vm340_vm1, %v785_v60, 0.0 }
 0x129   : > { %v789_v63 = vpop.eup %788  ;;  %v387_v0 = vsel %vm340_vm1, %v787_v61, 0.0 }
 0x12a   : > { %v791_v1 = vpop.eup %790  ;;  %v388_v2 = vadd.f32 %v387_v0, %v386_v62  ;;  %v389_v3 = vsel %vm340_vm1, %v789_v63, 0.0 }
 0x12b   : > { %v793_v4 = vpop.eup %792  ;;  %v391_v6 = vsel %vm340_vm1, %v791_v1, 0.0 }
 0x12c   : > { %v390_v5 = vadd.f32 %v389_v3, %v388_v2  ;;  %v795_v7 = vpop.eup %794  ;;  %v393_v9 = vsel %vm340_vm1, %v793_v4, 0.0 }
 0x12d   : > { %v797_v10 = vpop.eup %796  ;;  %v395_v12 = vsel %vm340_vm1, %v795_v7, 0.0 }
 0x12e   : > { %v392_v8 = vadd.f32 %v391_v6, %v390_v5  ;;  %v799_v13 = vpop.eup %798  ;;  %v397_v15 = vsel %vm340_vm1, %v797_v10, 0.0 }
 0x12f   : > { %v399_v17 = vsel %vm340_vm1, %v799_v13, 0.0 }
 0x130   : > { %v394_v11 = vadd.f32 %v393_v9, %v392_v8 }
 0x132   : > { %v396_v14 = vadd.f32 %v395_v12, %v394_v11 }
 0x134   : > { %v398_v16 = vadd.f32 %v397_v15, %v396_v14 }
 0x136   : > { %v400_v18 = vadd.f32 %v399_v17, %v398_v16 }
 0x138   : > { %v401_v19 = vrot.slane %v400_v18, 4 }
 0x13a   : > { %v402_v20 = vadd.f32 %v401_v19, %v400_v18 }
 0x13c   : > { %v403_v21 = vrot.slane %v402_v20, 2 }
 0x13e   : > { %v404_v22 = vadd.f32 %v403_v21, %v402_v20 }
 0x140   : > { %v405_v23 = vrot.slane %v404_v22, 1 }
 0x142   : > { %v406_v24 = vadd.f32 %v405_v23, %v404_v22 }
 0x144   : > { %800 = vrcp.f32 %v406_v24 }
 0x14e   : > { %v801_v25 = vpop.eup %800 }
 0x14f   : > { %v408_v26 = vmul.f32 %v801_v25, %v785_v60  ;;  %v409_v27 = vmul.f32 %v801_v25, %v787_v61  ;;  %v410_v28 = vmul.f32 %v801_v25, %v789_v63  ;;  %v411_v29 = vmul.f32 %v801_v25, %v791_v1 }
 0x150   : > { %v412_v30 = vmul.f32 %v801_v25, %v793_v4  ;;  %v413_v31 = vmul.f32 %v801_v25, %v795_v7  ;;  %v414_v32 = vmul.f32 %v801_v25, %v797_v10  ;;  %v415_v33 = vmul.f32 %v801_v25, %v799_v13 }
 0x151   : > { %v711_v34 = vpack.c.bf16 %v409_v27, %v408_v26  ;;  %v715_v35 = vpack.c.bf16 %v411_v29, %v410_v28 }
 0x152   : > { %v719_v36 = vpack.c.bf16 %v413_v31, %v412_v30  ;;  %v723_v37 = vpack.c.bf16 %v415_v33, %v414_v32 }
 0x153   : > { %712 = vmatprep.subr.bf16.mxu1 %v711_v34 }
 0x154   : > { %714 = vmatpush3.bf16.msra.mxu1 %v711_v34 }
 0x155   : > { %716 = vmatprep.subr.bf16.mxu1 %v715_v35 }
 0x158   : > { %718 = vmatpush3.bf16.msra.mxu1 %v715_v35 }
 0x159   : > { %720 = vmatprep.subr.bf16.mxu1 %v719_v36 }
 0x15c   : > { %722 = vmatpush3.bf16.msra.mxu1 %v719_v36 }
 0x15d   : > { %724 = vmatprep.subr.bf16.mxu1 %v723_v37 }
 0x160   : > { %726 = vmatpush3.bf16.msra.mxu1 %v723_v37 }
 0x163   : > { %698 = vmatmul.mubr.msk.f32.vlgmr.msra.gmra.mrb[0].mxu1 %vm340_vm1, %v203_v38 }
 0x164   : > { %700 = vmatprep.mubr.msk.f32.mxu1 %vm340_vm1, %v204_v39 }
 0x167   : > { %701 = vmatmul.mubr.msk.f32.gmra.mrb[2].mxu1 %vm340_vm1, %v205_v40 }
 0x236   : > { %v699_v41 = vpop.f32.mrb[0].mxu1 }
 0x237   : > { %514 = vst.msk [vmem:[%s185_s19 + $0x8] sm:$0xff] %vm340_vm1, %v699_v41  ;;  %v494_v42 = vpop.f32.mrb[1].mxu1 }
 0x238   : > { %513 = vst.msk [vmem:[%s185_s19] sm:$0xff] %vm340_vm1, %v494_v42 }
 0x23a   : > { %v702_v43 = vpop.f32.mrb[2].mxu1 }
 0x23b   : > { %516 = vst.msk [vmem:[%s185_s19 + $0x18] sm:$0xff] %vm340_vm1, %v702_v43  ;;  %v504_v44 = vpop.f32.mrb[3].mxu1 }
 0x23c   : > { %515 = vst.msk [vmem:[%s185_s19 + $0x10] sm:$0xff] %vm340_vm1, %v504_v44 }
 0x23d   : > { %815 = shalt.err (!%p812_p5)
}
 0x23e   : > { %s816_s6 = scalar_lea.hbm %s1038_s28, 512  ;;  %s820_s9 = scalar_lea.hbm %s1091_s3, 1024 }
 0x23f   : > { %p817_p6 = scmp.ne.s32.totalorder %s1038_s28, %s816_s6  ;;  %p821_p10 = scmp.lt.u32.totalorder %s1038_s28, %s1091_s3 }
 0x240   : > { %p822_p11 = scmp.lt.u32.totalorder %s820_s9, %s816_s6  ;;  %p824_p13 = scmp.lt.u32.totalorder %s816_s6, %s1038_s28 }
 0x241   : > { %p818_p7 = pnand %p817_p6, %p945_p4 }
 0x242   : > { %p823_p12 = por %p822_p11, %p821_p10 }
 0x243   : > { %p819_p9 = pneg %p818_p7 }
 0x244   : > { %p825_p0 = por %p824_p13, %p823_p12 }
 0x246   : > { %p826_p1 = pnand %p825_p0, %p819_p9 }
 0x248   : > { %829 = shalt.err (!%p826_p1)
}
 0x249   : > { %s883_s18 = smov 128   ;;  %s884_s19 = smov 8  }
 0x24a   : > { %727 = dma.vmem_to_hbm [thread:$0]  (%p945_p4), %s1033_s21, 512, %s1038_s28, %s1042_s29, %s883_s18, %s883_s18, %s884_s19  }
 0x24b PF: > { %p733_p2 = scmp.ge.s32.totalorder %s880_s17, 2  ;;  %s547_s23 = sand.u32 1, %s860_s12  }
 0x24c   : > { %s548_s26 = scalar_lea.sflag [#allocation3], %s547_s23 }
 0x24d   : > { %p730_p3 = pnand %p733_p2, %p952_p8 }
 0x24f   : > { %855 = dma.done.wait (!%p730_p3), %s548_s26, 512  }
 0x250   : > { %857 = vsyncadd (!%p730_p3), %s548_s26, 4294966784  ;;  %s16_s17 = sadd.s32 1, %s880_s17   ;;  %s1094_s12 = smov %s864_s13 }
 0x251   : > { %p13_p5 = scmp.ge.s32.totalorder %s16_s17, 4   ;;  %s1095_s13 = smov %s868_s14 }
 0x252   : > { %s1096_s14 = smov %s958_s25  ;;  %s1097_s15 = smov %s876_s16 }
 0x253   : > { %s1098_s16 = smov %s1100_s20  ;;  %15 = sbr.rel (!%p13_p5) target bundleno = 4 (0x4), region = 67 }
 0x25a   :  { %553 = vsyncpa [#allocation3], 1 }
 0x25b   :  { %555 = vsyncpa [#allocation3 + $0x1], 1 }

</bundles_post_ra>
